<compile_context>
chip_gen: v5e
topology: v5e:2x2
jax: 0.10.0
libtpu: 0.0.40
codegen_flags: <defaults>
</compile_context>

<pallas_src>
import functools

import jax
import jax.numpy as jnp
from jax.experimental import pallas as pl
from jax.experimental.pallas import tpu as pltpu

_LANE = 128
_SUBLANE = 8


def _round_up(x, m):
    return ((x + m - 1) // m) * m


def _make_mlp_kernel(compute_dtype):
    """Fused 3-layer MLP: relu(relu(x@W1+b1)@W2+b2)@W3+b3 (no final ReLU)."""

    def kernel(x_ref, w1_ref, b1_ref, w2_ref, b2_ref, w3_ref, b3_ref, o_ref):
        x = x_ref[...].astype(compute_dtype)

        h = jnp.dot(x, w1_ref[...].astype(compute_dtype),
                    preferred_element_type=jnp.float32)
        h = jnp.maximum(h + b1_ref[...], 0.0)

        h = jnp.dot(h.astype(compute_dtype), w2_ref[...].astype(compute_dtype),
                    preferred_element_type=jnp.float32)
        h = jnp.maximum(h + b2_ref[...], 0.0)

        out = jnp.dot(h.astype(compute_dtype), w3_ref[...].astype(compute_dtype),
                      preferred_element_type=jnp.float32)
        o_ref[...] = (out + b3_ref[...]).astype(o_ref.dtype)

    return kernel


@functools.partial(jax.jit, static_argnames=("tm", "use_bf16_inputs"))
def mlp_base_forward(x, params, *, tm=None, use_bf16_inputs=False):
    """Run the fused MLP Pallas kernel.

    x:      (B, in_dim) float32
    params: dict with w1 (in_dim, H), b1 (1, H), w2 (H, H), b2 (1, H),
            w3 (H, C_out), b3 (1, C_out)
    """
    B, in_dim = x.shape
    H = params["w1"].shape[1]
    out_dim = params["w3"].shape[1]

    # ---- pad hidden / output dims to full 128-lane width (lane-dense stores,
    # ---- no masked vst). Zero padding is numerically exact and sliced off.
    h_pad = _round_up(H, _LANE)
    o_pad = _round_up(out_dim, _LANE)

    def pad2(a, r, c):
        return jnp.zeros((r, c), a.dtype).at[: a.shape[0], : a.shape[1]].set(a)

    w1 = pad2(params["w1"], in_dim, h_pad)
    b1 = pad2(params["b1"], 1, h_pad)
    w2 = pad2(params["w2"], h_pad, h_pad)
    b2 = pad2(params["b2"], 1, h_pad)
    w3 = pad2(params["w3"], h_pad, o_pad)
    b3 = pad2(params["b3"], 1, o_pad)

    w_dtype = jnp.bfloat16 if use_bf16_inputs else x.dtype
    w1, w2, w3 = (w.astype(w_dtype) for w in (w1, w2, w3))
    compute_dtype = jnp.bfloat16 if use_bf16_inputs else jnp.float32

    # ---- batch tiling: pad B to a multiple of the batch tile TM. Big TM
    # ---- amortizes per-step overhead; tiny problems collapse to one step.
    b_pad = _round_up(B, _SUBLANE)
    if tm is None:
        tm = min(512, b_pad)          # well under VMEM budget on v5e/v6e/v7x
    b_pad = _round_up(b_pad, tm)
    x_p = jnp.zeros((b_pad, in_dim), x.dtype).at[:B, :].set(x)

    grid = (b_pad // tm,)

    resident = lambda shape: pl.BlockSpec(shape, lambda i: (0, 0))

    out_padded = pl.pallas_call(
        _make_mlp_kernel(compute_dtype),
        out_shape=jax.ShapeDtypeStruct((b_pad, o_pad), jnp.float32),
        grid=grid,
        in_specs=[
            pl.BlockSpec((tm, in_dim), lambda i: (i, 0)),   # x: streamed per step
            resident((in_dim, h_pad)), resident((1, h_pad)),  # w1, b1: resident
            resident((h_pad, h_pad)), resident((1, h_pad)),   # w2, b2: resident
            resident((h_pad, o_pad)), resident((1, o_pad)),   # w3, b3: resident
        ],
        out_specs=pl.BlockSpec((tm, o_pad), lambda i: (i, 0)),
        compiler_params=pltpu.CompilerParams(
            dimension_semantics=("parallel",),      # shard batch tiles across TCs (v7x)
            vmem_limit_bytes=32 * 1024 * 1024,      # safe on v5e/v6e/v7x
        ),
    )(x_p, w1, b1, w2, b2, w3, b3)

    return out_padded[:B, :out_dim]


def init_params(key, in_dim, hidden, num_classes, layers=2):
    """Deterministic init matching MLPBase layer shapes.

    MLPBase(num_classes, in_dim, layers=2, hidden) builds:
      Linear(in_dim, hidden) -> ReLU -> Linear(hidden, hidden) -> ReLU
      -> Linear(hidden, 2 if num_classes==0 else num_classes)
    """
    assert layers == 2, "this script instantiates the default 2-hidden-layer MLP"
    out_dim = 2 if num_classes == 0 else num_classes
    dims = [(in_dim, hidden), (hidden, hidden), (hidden, out_dim)]
    params = {}
    for i, (fan_in, fan_out) in enumerate(dims, start=1):
        key, kw, kb = jax.random.split(key, 3)
        bound = 1.0 / jnp.sqrt(jnp.float32(fan_in))  # PyTorch-style uniform bound
        params[f"w{i}"] = jax.random.uniform(
            kw, (fan_in, fan_out), jnp.float32, minval=-bound, maxval=bound)
        params[f"b{i}"] = jax.random.uniform(
            kb, (1, fan_out), jnp.float32, minval=-bound, maxval=bound)
    return params


def mlp_reference(x, params):
    h = jnp.maximum(x @ params["w1"] + params["b1"], 0.0)
    h = jnp.maximum(h @ params["w2"] + params["b2"], 0.0)
    return h @ params["w3"] + params["b3"]


if __name__ == "__main__":
    # Small shapes consistent with the module: batch=8, in_dim=4, hidden=32,
    # num_classes=0 (so final layer outputs 2 logits).
    B, IN_DIM, HIDDEN, NUM_CLASSES = 8, 4, 32, 0

    key = jax.random.PRNGKey(0)
    key, kx = jax.random.split(key)
    x = jax.random.normal(kx, (B, IN_DIM), jnp.float32)
    params = init_params(key, IN_DIM, HIDDEN, NUM_CLASSES)

    out = mlp_base_forward(x, params)           # f32 MXU path (exact vs ref)
    out = jax.block_until_ready(out)

    ref = mlp_reference(x, params)
    assert out.shape == (B, 2), out.shape
    assert jnp.allclose(out, ref, atol=1e-5, rtol=1e-5), "mismatch vs reference"

    # Optional bf16-input path (f32 accumulate) for v6e/v7x; looser tolerance.
    out_bf16 = jax.block_until_ready(
        mlp_base_forward(x, params, use_bf16_inputs=True))
    assert jnp.allclose(out_bf16, ref, atol=3e-2, rtol=3e-2), "bf16 path mismatch"

    print("KERNEL_OK")
</pallas_src>

<mosaic_0001>
module attributes {stable_mosaic.version = 11 : i64} {
  func.func @kernel(%arg0: i32, %arg1: memref<8x4xf32, #tpu.memory_space<vmem>>, %arg2: memref<4x128xf32, #tpu.memory_space<vmem>>, %arg3: memref<1x128xf32, #tpu.memory_space<vmem>>, %arg4: memref<128x128xf32, #tpu.memory_space<vmem>>, %arg5: memref<1x128xf32, #tpu.memory_space<vmem>>, %arg6: memref<128x128xf32, #tpu.memory_space<vmem>>, %arg7: memref<1x128xf32, #tpu.memory_space<vmem>>, %arg8: memref<8x128xf32, #tpu.memory_space<vmem>>) attributes {dimension_semantics = [#tpu.dimension_semantics<parallel>], iteration_bounds = array<i64: 1>, scalar_prefetch = 0 : i64, scratch_operands = 0 : i64, tpu.core_type = #tpu.core_type<tc>, window_params = [{transform_indices = @transform_0, window_bounds = array<i64: 8, 4>}, {pipeline_mode = #tpu.pipeline_mode<synchronous>, transform_indices = @transform_1, window_bounds = array<i64: 4, 128>}, {pipeline_mode = #tpu.pipeline_mode<synchronous>, transform_indices = @transform_2, window_bounds = array<i64: 1, 128>}, {pipeline_mode = #tpu.pipeline_mode<synchronous>, transform_indices = @transform_3, window_bounds = array<i64: 128, 128>}, {pipeline_mode = #tpu.pipeline_mode<synchronous>, transform_indices = @transform_4, window_bounds = array<i64: 1, 128>}, {pipeline_mode = #tpu.pipeline_mode<synchronous>, transform_indices = @transform_5, window_bounds = array<i64: 128, 128>}, {pipeline_mode = #tpu.pipeline_mode<synchronous>, transform_indices = @transform_6, window_bounds = array<i64: 1, 128>}, {transform_indices = @transform_7, window_bounds = array<i64: 8, 128>}]} {
    %c0 = arith.constant 0 : index
    %c0_0 = arith.constant 0 : index
    %0 = vector.load %arg1[%c0, %c0_0] : memref<8x4xf32, #tpu.memory_space<vmem>>, vector<8x4xf32>
    %c0_1 = arith.constant 0 : index
    %c0_2 = arith.constant 0 : index
    %1 = vector.load %arg2[%c0_1, %c0_2] : memref<4x128xf32, #tpu.memory_space<vmem>>, vector<4x128xf32>
    %cst = arith.constant dense<0.000000e+00> : vector<8x128xf32>
    %2 = tpu.matmul %0, %1, %cst {dimension_numbers = #tpu.dot_dimension_numbers<[1], [0], [0], [1], [0, 0, 1, 1], [], []>} : vector<8x4xf32>, vector<4x128xf32>, vector<8x128xf32> -> vector<8x128xf32>
    %c0_3 = arith.constant 0 : index
    %c0_4 = arith.constant 0 : index
    %3 = vector.load %arg3[%c0_3, %c0_4] : memref<1x128xf32, #tpu.memory_space<vmem>>, vector<1x128xf32>
    %4 = vector.broadcast %3 : vector<1x128xf32> to vector<8x128xf32>
    %5 = arith.addf %2, %4 : vector<8x128xf32>
    %cst_5 = arith.constant 0.000000e+00 : f32
    %6 = vector.broadcast %cst_5 : f32 to vector<8x128xf32>
    %7 = arith.maximumf %5, %6 : vector<8x128xf32>
    %c0_6 = arith.constant 0 : index
    %c0_7 = arith.constant 0 : index
    %8 = vector.load %arg4[%c0_6, %c0_7] : memref<128x128xf32, #tpu.memory_space<vmem>>, vector<128x128xf32>
    %cst_8 = arith.constant dense<0.000000e+00> : vector<8x128xf32>
    %9 = tpu.matmul %7, %8, %cst_8 {dimension_numbers = #tpu.dot_dimension_numbers<[1], [0], [0], [1], [0, 0, 1, 1], [], []>} : vector<8x128xf32>, vector<128x128xf32>, vector<8x128xf32> -> vector<8x128xf32>
    %c0_9 = arith.constant 0 : index
    %c0_10 = arith.constant 0 : index
    %10 = vector.load %arg5[%c0_9, %c0_10] : memref<1x128xf32, #tpu.memory_space<vmem>>, vector<1x128xf32>
    %11 = vector.broadcast %10 : vector<1x128xf32> to vector<8x128xf32>
    %12 = arith.addf %9, %11 : vector<8x128xf32>
    %cst_11 = arith.constant 0.000000e+00 : f32
    %13 = vector.broadcast %cst_11 : f32 to vector<8x128xf32>
    %14 = arith.maximumf %12, %13 : vector<8x128xf32>
    %c0_12 = arith.constant 0 : index
    %c0_13 = arith.constant 0 : index
    %15 = vector.load %arg6[%c0_12, %c0_13] : memref<128x128xf32, #tpu.memory_space<vmem>>, vector<128x128xf32>
    %cst_14 = arith.constant dense<0.000000e+00> : vector<8x128xf32>
    %16 = tpu.matmul %14, %15, %cst_14 {dimension_numbers = #tpu.dot_dimension_numbers<[1], [0], [0], [1], [0, 0, 1, 1], [], []>} : vector<8x128xf32>, vector<128x128xf32>, vector<8x128xf32> -> vector<8x128xf32>
    %c0_15 = arith.constant 0 : index
    %c0_16 = arith.constant 0 : index
    %17 = vector.load %arg7[%c0_15, %c0_16] : memref<1x128xf32, #tpu.memory_space<vmem>>, vector<1x128xf32>
    %18 = vector.broadcast %17 : vector<1x128xf32> to vector<8x128xf32>
    %19 = arith.addf %16, %18 : vector<8x128xf32>
    %c0_17 = arith.constant 0 : index
    %c0_18 = arith.constant 0 : index
    %20 = vector.load %arg8[%c0_17, %c0_18] : memref<8x128xf32, #tpu.memory_space<vmem>>, vector<8x128xf32>
    tpu.vector_store %arg8[%c0_17, %c0_18], %19 {strides = array<i32>} : memref<8x128xf32, #tpu.memory_space<vmem>>, vector<8x128xf32>,
    return
  }
  func.func @transform_0(%arg0: i32) -> (i32, i32) {
    %c0_i32 = arith.constant 0 : i32
    %c0_i32_0 = arith.constant 0 : i32
    return %arg0, %c0_i32 : i32, i32
  }
  func.func @transform_1(%arg0: i32) -> (i32, i32) {
    %c0_i32 = arith.constant 0 : i32
    %c0_i32_0 = arith.constant 0 : i32
    %c0_i32_1 = arith.constant 0 : i32
    return %c0_i32, %c0_i32_0 : i32, i32
  }
  func.func @transform_2(%arg0: i32) -> (i32, i32) {
    %c0_i32 = arith.constant 0 : i32
    %c0_i32_0 = arith.constant 0 : i32
    %c0_i32_1 = arith.constant 0 : i32
    return %c0_i32, %c0_i32_0 : i32, i32
  }
  func.func @transform_3(%arg0: i32) -> (i32, i32) {
    %c0_i32 = arith.constant 0 : i32
    %c0_i32_0 = arith.constant 0 : i32
    %c0_i32_1 = arith.constant 0 : i32
    return %c0_i32, %c0_i32_0 : i32, i32
  }
  func.func @transform_4(%arg0: i32) -> (i32, i32) {
    %c0_i32 = arith.constant 0 : i32
    %c0_i32_0 = arith.constant 0 : i32
    %c0_i32_1 = arith.constant 0 : i32
    return %c0_i32, %c0_i32_0 : i32, i32
  }
  func.func @transform_5(%arg0: i32) -> (i32, i32) {
    %c0_i32 = arith.constant 0 : i32
    %c0_i32_0 = arith.constant 0 : i32
    %c0_i32_1 = arith.constant 0 : i32
    return %c0_i32, %c0_i32_0 : i32, i32
  }
  func.func @transform_6(%arg0: i32) -> (i32, i32) {
    %c0_i32 = arith.constant 0 : i32
    %c0_i32_0 = arith.constant 0 : i32
    %c0_i32_1 = arith.constant 0 : i32
    return %c0_i32, %c0_i32_0 : i32, i32
  }
  func.func @transform_7(%arg0: i32) -> (i32, i32) {
    %c0_i32 = arith.constant 0 : i32
    %c0_i32_0 = arith.constant 0 : i32
    return %arg0, %c0_i32 : i32, i32
  }
}

</mosaic_0001>

<bundles_post_ra>
// kernel: mlp_base_forward.1
= control target key start
LH: loop header
LB: loop body
LE: loop exit
PB: predicated region body
PF: predicated region fallthrough
CT: control target
= control target key end

     0   :  { %vm36_vm0 = vcmask 1043456   ;;  %vm32_vm1 = vcmask 31744   ;;  %s306_s1 = inlined_call_operand.vmem [shape: f32[4,128], index: 1, kind: input, shape index: {}]   ;;  %s307_s0 = inlined_call_operand.vmem [shape: f32[8,4], index: 0, kind: input, shape index: {}]   ;;  %s308_s3 = inlined_call_operand.vmem [shape: f32[128,128], index: 3, kind: input, shape index: {}]   ;;  %s309_s2 = inlined_call_operand.vmem [shape: f32[1,128], index: 2, kind: input, shape index: {}]   ;;  %s310_s4 = inlined_call_operand.vmem [shape: f32[1,128], index: 4, kind: input, shape index: {}]   ;;  %s311_s5 = inlined_call_operand.vmem [shape: f32[128,128], index: 5, kind: input, shape index: {}]   ;;  %s312_s6 = inlined_call_operand.vmem [shape: f32[1,128], index: 6, kind: input, shape index: {}]   ;;  %s313_s7 = inlined_call_operand.vmem [shape: f32[8,128], index: 7, kind: output, shape index: {}]  }
   0x1   :  { %v27_v0 = vld [vmem:[%s306_s1] sm:$0xf]  ;;  %v76_v2 = vld [vmem:[%s308_s3 + $0x78] sm:$0xff]  ;;  %v75_v3 = vld [vmem:[%s308_s3 + $0x70] sm:$0xff] }
   0x2   :  { %v26_v1 = vld [vmem:[%s307_s0] sm:$0xff]  ;;  %147 = vmatpush.msk.msra.mxu0 %vm36_vm0, %v27_v0  ;;  %81 = vmatpush.msra.mxu1 %v76_v2  ;;  %v74_v4 = vld [vmem:[%s308_s3 + $0x68] sm:$0xff]  ;;  %v72_v6 = vld [vmem:[%s308_s3 + $0x58] sm:$0xff] }
   0x3   :  { %148 = vmatmul.msk.f32.vlgmr.msra.gmra.mxu0 %vm32_vm1, %v26_v1  ;;  %v73_v5 = vld [vmem:[%s308_s3 + $0x60] sm:$0xff]  ;;  %v71_v7 = vld [vmem:[%s308_s3 + $0x50] sm:$0xff]  ;;  %v70_v8 = vld [vmem:[%s308_s3 + $0x48] sm:$0xff] }
   0x4   :  { %82 = vmatpush.msra.mxu1 %v75_v3  ;;  %v69_v9 = vld [vmem:[%s308_s3 + $0x40] sm:$0xff]  ;;  %v68_v10 = vld [vmem:[%s308_s3 + $0x38] sm:$0xff]  ;;  %v67_v11 = vld [vmem:[%s308_s3 + $0x30] sm:$0xff] }
   0x5   :  { %v66_v12 = vld [vmem:[%s308_s3 + $0x28] sm:$0xff]  ;;  %v65_v13 = vld [vmem:[%s308_s3 + $0x20] sm:$0xff]  ;;  %v64_v14 = vld [vmem:[%s308_s3 + $0x18] sm:$0xff] }
   0x6   :  { %83 = vmatpush.msra.mxu1 %v74_v4  ;;  %v63_v15 = vld [vmem:[%s308_s3 + $0x10] sm:$0xff]  ;;  %v62_v16 = vld [vmem:[%s308_s3 + $0x8] sm:$0xff]  ;;  %v61_v17 = vld [vmem:[%s308_s3] sm:$0xff] }
   0x7   :  { %v117_v18 = vld [vmem:[%s311_s5 + $0x78] sm:$0xff]  ;;  %v116_v19 = vld [vmem:[%s311_s5 + $0x70] sm:$0xff]  ;;  %v115_v20 = vld [vmem:[%s311_s5 + $0x68] sm:$0xff] }
   0x8   :  { %84 = vmatpush.msra.mxu1 %v73_v5  ;;  %122 = vmatpush.msra.mxu2 %v117_v18  ;;  %v114_v21 = vld [vmem:[%s311_s5 + $0x60] sm:$0xff]  ;;  %v113_v22 = vld [vmem:[%s311_s5 + $0x58] sm:$0xff]  ;;  %v112_v23 = vld [vmem:[%s311_s5 + $0x50] sm:$0xff] }
   0x9   :  { %v111_v24 = vld [vmem:[%s311_s5 + $0x48] sm:$0xff]  ;;  %v110_v25 = vld [vmem:[%s311_s5 + $0x40] sm:$0xff]  ;;  %v109_v26 = vld [vmem:[%s311_s5 + $0x38] sm:$0xff] }
   0xa   :  { %85 = vmatpush.msra.mxu1 %v72_v6  ;;  %123 = vmatpush.msra.mxu2 %v116_v19  ;;  %v108_v27 = vld [vmem:[%s311_s5 + $0x30] sm:$0xff]  ;;  %v107_v28 = vld [vmem:[%s311_s5 + $0x28] sm:$0xff]  ;;  %v106_v29 = vld [vmem:[%s311_s5 + $0x20] sm:$0xff] }
   0xb   :  { %v105_v30 = vld [vmem:[%s311_s5 + $0x18] sm:$0xff]  ;;  %v149_v31 = vld [vmem:[%s309_s2] ss:$0 sm:$0xff]  ;;  %v104_v35 = vld [vmem:[%s311_s5 + $0x10] sm:$0xff] }
   0xc   :  { %86 = vmatpush.msra.mxu1 %v71_v7  ;;  %124 = vmatpush.msra.mxu2 %v115_v20  ;;  %v103_v36 = vld [vmem:[%s311_s5 + $0x8] sm:$0xff]  ;;  %v102_v37 = vld [vmem:[%s311_s5] sm:$0xff] }
   0xd   :  { %v150_v38 = vld [vmem:[%s310_s4] ss:$0 sm:$0xff] }
   0xe   :  { %87 = vmatpush.msra.mxu1 %v70_v8  ;;  %125 = vmatpush.msra.mxu2 %v114_v21  ;;  %v151_v42 = vld [vmem:[%s312_s6] ss:$0 sm:$0xff] }
  0x10   :  { %88 = vmatpush.msra.mxu1 %v69_v9  ;;  %126 = vmatpush.msra.mxu2 %v113_v22 }
  0x12   :  { %89 = vmatpush.msra.mxu1 %v68_v10  ;;  %127 = vmatpush.msra.mxu2 %v112_v23 }
  0x14   :  { %90 = vmatpush.msra.mxu1 %v67_v11  ;;  %128 = vmatpush.msra.mxu2 %v111_v24 }
  0x16   :  { %91 = vmatpush.msra.mxu1 %v66_v12  ;;  %129 = vmatpush.msra.mxu2 %v110_v25 }
  0x18   :  { %92 = vmatpush.msra.mxu1 %v65_v13  ;;  %130 = vmatpush.msra.mxu2 %v109_v26 }
  0x1a   :  { %93 = vmatpush.msra.mxu1 %v64_v14  ;;  %131 = vmatpush.msra.mxu2 %v108_v27 }
  0x1c   :  { %94 = vmatpush.msra.mxu1 %v63_v15  ;;  %132 = vmatpush.msra.mxu2 %v107_v28 }
  0x1e   :  { %95 = vmatpush.msra.mxu1 %v62_v16  ;;  %133 = vmatpush.msra.mxu2 %v106_v29 }
  0x20   :  { %96 = vmatpush.msra.mxu1 %v61_v17  ;;  %134 = vmatpush.msra.mxu2 %v105_v30 }
  0x22   :  { %135 = vmatpush.msra.mxu2 %v104_v35 }
  0x24   :  { %136 = vmatpush.msra.mxu2 %v103_v36 }
  0x26   :  { %137 = vmatpush.msra.mxu2 %v102_v37 }
  0x80   :  { %v57_v32 = vpop.f32.mrf.mxu0 }
  0x81   :  { %v58_v33 = vadd.f32 %v149_v31, %v57_v32 }
  0x83   :  { %v60_v34 = vmax.f32 %v58_v33, 0.0 }
  0x85   :  { %97 = vmatmul.f32.vlgmr.msra.gmra.mxu1 %v60_v34 }
 0x102   :  { %v98_v39 = vpop.f32.mrf.mxu1 }
 0x103   :  { %v99_v40 = vadd.f32 %v150_v38, %v98_v39 }
 0x105   :  { %v101_v41 = vmax.f32 %v99_v40, 0.0 }
 0x107   :  { %138 = vmatmul.f32.vlgmr.msra.gmra.mxu2 %v101_v41 }
 0x18a   :  { %v139_v43 = vpop.f32.mrf.mxu2 }
 0x18b   :  { %v140_v44 = vadd.f32 %v151_v42, %v139_v43 }
 0x18d   :  { %142 = vst [vmem:[%s313_s7] sm:$0xff] %v140_v44 }

</bundles_post_ra>
